<compile_context>
chip_gen: v6e
topology: v6e:2x2x1
jax: 0.10.0
libtpu: 0.0.40
codegen_flags: <defaults>
</compile_context>

<pallas_src>
import math

import jax
import jax.numpy as jnp
from jax.experimental import pallas as pl
from jax.experimental.pallas import tpu as pltpu


def convnorm_kernel(x_ref, w_ref, b_ref, o_ref):
    """One MXU matmul per grid step: (tile_m, K*Cin) @ (K*Cin, Cout) + bias."""
    acc = jnp.dot(x_ref[...], w_ref[...], preferred_element_type=jnp.float32)
    o_ref[...] = (acc + b_ref[...]).astype(o_ref.dtype)


def build_convnorm(in_channels, out_channels, kernel_size=1, stride=1,
                   padding=None, dilation=1, compute_dtype=jnp.bfloat16):
    """Returns forward(signal, weight, bias) matching torch ConvNorm semantics."""
    if padding is None:
        assert kernel_size % 2 == 1
        padding = int(dilation * (kernel_size - 1) / 2)

    K, C_in, C_out = kernel_size, in_channels, out_channels
    KC = K * C_in

    def forward(signal, weight, bias_vec=None):
        # signal: (B, C_in, L)  -- torch Conv1d layout
        # weight: (C_out, C_in, K) -- torch Conv1d weight layout
        B, C, L = signal.shape
        assert C == C_in
        L_out = (L + 2 * padding - dilation * (K - 1) - 1) // stride + 1

        # --- wrapper-side layout plumbing: channels-last + im2col (lane axis) ---
        x = jnp.transpose(signal, (0, 2, 1)).astype(compute_dtype)        # (B, L, Cin)
        xp = jnp.pad(x, ((0, 0), (padding, padding), (0, 0)))
        taps = [xp[:, k * dilation:k * dilation + (L_out - 1) * stride + 1:stride, :]
                for k in range(K)]
        x_col = jnp.concatenate(taps, axis=-1)                            # (B, L_out, K*Cin)

        # stack batches along sublanes: one big (M, K*Cin) row matrix
        M = B * L_out
        x2d = x_col.reshape(M, KC)

        tile_m = M if M <= 1024 else 512                                  # 512 % (8) == 0
        Mp = -(-M // tile_m) * tile_m
        if Mp != M:
            x2d = jnp.pad(x2d, ((0, Mp - M), (0, 0)))
        n_tiles = Mp // tile_m

        # weight (C_out, C_in, K) -> (K*C_in, C_out), rows ordered as k*C_in + c
        w_mat = jnp.transpose(weight, (2, 1, 0)).reshape(KC, C_out).astype(compute_dtype)
        b_row = (bias_vec if bias_vec is not None
                 else jnp.zeros((C_out,), jnp.float32)).reshape(1, C_out).astype(jnp.float32)

        # explicit VMEM budget: double-buffered x/out blocks + resident weights + slack
        vmem_bytes = 2 * (tile_m * KC * 2 + tile_m * C_out * 4) + KC * C_out * 2
        vmem_bytes = int(min(max(2 * vmem_bytes + (1 << 20), 2 << 20), 48 << 20))

        grid_spec = pltpu.PrefetchScalarGridSpec(
            num_scalar_prefetch=0,
            grid=(n_tiles,),
            in_specs=[
                pl.BlockSpec((tile_m, KC), lambda i: (i, 0)),      # im2col rows
                pl.BlockSpec((KC, C_out), lambda i: (0, 0)),       # fused conv weight
                pl.BlockSpec((1, C_out), lambda i: (0, 0)),        # bias
            ],
            out_specs=pl.BlockSpec((tile_m, C_out), lambda i: (i, 0)),
        )

        out2d = pl.pallas_call(
            convnorm_kernel,
            grid_spec=grid_spec,
            out_shape=jax.ShapeDtypeStruct((Mp, C_out), jnp.float32),
            compiler_params=pltpu.CompilerParams(
                dimension_semantics=("parallel",),
                vmem_limit_bytes=vmem_bytes),
        )(x2d, w_mat, b_row)

        out = out2d[:M].reshape(B, L_out, C_out)
        return jnp.transpose(out, (0, 2, 1))                              # (B, C_out, L_out)

    return forward


def reference_convnorm(signal, weight, bias_vec, stride, padding, dilation):
    """Pure-JAX reference mirroring torch.nn.Conv1d."""
    out = jax.lax.conv_general_dilated(
        signal, weight,
        window_strides=(stride,),
        padding=[(padding, padding)],
        rhs_dilation=(dilation,),
        dimension_numbers=("NCH", "OIH", "NCH"))
    if bias_vec is not None:
        out = out + bias_vec[None, :, None]
    return out


if __name__ == "__main__":
    # Small shapes consistent with ConvNorm usage in FastSpeech2
    # (Conv1d over (B, C, L) with odd kernel and 'same' padding).
    B, C_in, C_out, L, K = 2, 8, 16, 16, 3

    key = jax.random.PRNGKey(0)
    k1, k2, k3 = jax.random.split(key, 3)
    scale = 1.0 / math.sqrt(C_in * K)
    signal = jax.random.normal(k1, (B, C_in, L), jnp.float32)
    weight = jax.random.normal(k2, (C_out, C_in, K), jnp.float32) * scale
    bias_vec = jax.random.normal(k3, (C_out,), jnp.float32) * 0.1

    forward = build_convnorm(C_in, C_out, kernel_size=K)   # padding derived = (K-1)//2
    out = forward(signal, weight, bias_vec)
    out = jax.block_until_ready(out)

    ref = reference_convnorm(signal, weight, bias_vec,
                             stride=1, padding=(K - 1) // 2, dilation=1)
    assert out.shape == (B, C_out, L)
    # bf16 operands with f32 accumulation -> compare with a modest tolerance
    assert jnp.allclose(out, ref, atol=2e-2, rtol=2e-2), "mismatch vs JAX reference"
    print("KERNEL_OK")
</pallas_src>

<mosaic_0001>
module attributes {stable_mosaic.version = 11 : i64} {
  func.func @convnorm_kernel(%arg0: i32, %arg1: memref<32x24xbf16, #tpu.memory_space<vmem>>, %arg2: memref<24x16xbf16, #tpu.memory_space<vmem>>, %arg3: memref<1x16xf32, #tpu.memory_space<vmem>>, %arg4: memref<32x16xf32, #tpu.memory_space<vmem>>) attributes {dimension_semantics = [#tpu.dimension_semantics<parallel>], iteration_bounds = array<i64: 1>, scalar_prefetch = 0 : i64, scratch_operands = 0 : i64, tpu.core_type = #tpu.core_type<tc>, window_params = [{transform_indices = @transform_0, window_bounds = array<i64: 32, 24>}, {pipeline_mode = #tpu.pipeline_mode<synchronous>, transform_indices = @transform_1, window_bounds = array<i64: 24, 16>}, {pipeline_mode = #tpu.pipeline_mode<synchronous>, transform_indices = @transform_2, window_bounds = array<i64: 1, 16>}, {transform_indices = @transform_3, window_bounds = array<i64: 32, 16>}]} {
    %c0 = arith.constant 0 : index
    %c0_0 = arith.constant 0 : index
    %0 = vector.load %arg1[%c0, %c0_0] : memref<32x24xbf16, #tpu.memory_space<vmem>>, vector<32x24xbf16>
    %c0_1 = arith.constant 0 : index
    %c0_2 = arith.constant 0 : index
    %1 = vector.load %arg2[%c0_1, %c0_2] : memref<24x16xbf16, #tpu.memory_space<vmem>>, vector<24x16xbf16>
    %cst = arith.constant dense<0.000000e+00> : vector<32x16xf32>
    %2 = tpu.matmul %0, %1, %cst {dimension_numbers = #tpu.dot_dimension_numbers<[1], [0], [0], [1], [0, 0, 1, 1], [], []>} : vector<32x24xbf16>, vector<24x16xbf16>, vector<32x16xf32> -> vector<32x16xf32>
    %c0_3 = arith.constant 0 : index
    %c0_4 = arith.constant 0 : index
    %3 = vector.load %arg3[%c0_3, %c0_4] : memref<1x16xf32, #tpu.memory_space<vmem>>, vector<1x16xf32>
    %4 = vector.broadcast %3 : vector<1x16xf32> to vector<32x16xf32>
    %5 = arith.addf %2, %4 : vector<32x16xf32>
    %c0_5 = arith.constant 0 : index
    %c0_6 = arith.constant 0 : index
    %6 = vector.load %arg4[%c0_5, %c0_6] : memref<32x16xf32, #tpu.memory_space<vmem>>, vector<32x16xf32>
    tpu.vector_store %arg4[%c0_5, %c0_6], %5 {strides = array<i32>} : memref<32x16xf32, #tpu.memory_space<vmem>>, vector<32x16xf32>,
    return
  }
  func.func @transform_0(%arg0: i32) -> (i32, i32) {
    %c0_i32 = arith.constant 0 : i32
    %c0_i32_0 = arith.constant 0 : i32
    return %arg0, %c0_i32 : i32, i32
  }
  func.func @transform_1(%arg0: i32) -> (i32, i32) {
    %c0_i32 = arith.constant 0 : i32
    %c0_i32_0 = arith.constant 0 : i32
    %c0_i32_1 = arith.constant 0 : i32
    return %c0_i32, %c0_i32_0 : i32, i32
  }
  func.func @transform_2(%arg0: i32) -> (i32, i32) {
    %c0_i32 = arith.constant 0 : i32
    %c0_i32_0 = arith.constant 0 : i32
    %c0_i32_1 = arith.constant 0 : i32
    return %c0_i32, %c0_i32_0 : i32, i32
  }
  func.func @transform_3(%arg0: i32) -> (i32, i32) {
    %c0_i32 = arith.constant 0 : i32
    %c0_i32_0 = arith.constant 0 : i32
    return %arg0, %c0_i32 : i32, i32
  }
}

</mosaic_0001>

<bundles_post_ra>
// kernel: tpu_custom_call.1
= control target key start
LH: loop header
LB: loop body
LE: loop exit
PB: predicated region body
PF: predicated region fallthrough
CT: control target
= control target key end

     0   :  { %vm55_vm0 = vcmask 1043456   ;;  %vm48_vm1 = vcmask 195584   ;;  %vm108_vm2 = vcmask 130048   ;;  %s188_s1 = inlined_call_operand.vmem [shape: bf16[24,16], index: 1, kind: input, shape index: {}]   ;;  %s189_s0 = inlined_call_operand.vmem [shape: bf16[32,24], index: 0, kind: input, shape index: {}]   ;;  %s190_s2 = inlined_call_operand.vmem [shape: f32[1,16], index: 2, kind: input, shape index: {}]   ;;  %s191_s3 = inlined_call_operand.vmem [shape: f32[32,16], index: 3, kind: output, shape index: {}]  }
   0x1   :  { %v137_v0 = vld [vmem:[%s188_s1 + $0x8] ss:$0 sps:$4 sm:$0xff]   ;;  %v138_v1 = vld [vmem:[%s188_s1] sm:$0xff]  }
   0x2   :  { %136 = vmatprep.subr.msk.bf16.mxu0 %vm55_vm0, %v137_v0  ;;  %v57_v2 = vsel %vm55_vm0, %v137_v0, 0  ;;  %v139_v3 = vld [vmem:[%s189_s0] sm:$0xff]   ;;  %v140_v4 = vld [vmem:[%s189_s0 + $0x8] sm:$0xff]  }
   0x3   :  { %129 = vmatpush3.bf16.msra.mxu0 %v57_v2  ;;  %132 = vmatprep.mubr.msk.bf16.mxu0 %vm48_vm1, %v139_v3  ;;  %v117_v5 = vld [vmem:[%s190_s2] ss:$0 sm:$0xff] }
   0x4   :  { %130 = vmatprep.subr.bf16.mxu0 %v138_v1 }
   0x7   :  { %131 = vmatpush3.bf16.msra.mxu0 %v138_v1 }
   0xa   :  { %133 = vmatmul.mubr.msk.bf16.vlgmr.msra.gmra.mxu0 %vm48_vm1, %v140_v4 }
  0xca   :  { %v134_v6 = vpop.f32.mrf.mxu0 }
  0xcb   :  { %v102_v7 = vadd.f32 %v134_v6, %v117_v5 }
  0xcc   :  { %v93_v8 = vpop.f32.mrf.mxu0 }
  0xcd   :  { %111 = vst.msk [vmem:[%s191_s3 + $0x10] sm:$0xff] %vm108_vm2, %v102_v7  ;;  %v94_v9 = vadd.f32 %v117_v5, %v93_v8 }
  0xce   :  { %v135_v10 = vpop.f32.mrf.mxu0 }
  0xcf   :  { %109 = vst.msk [vmem:[%s191_s3] sm:$0xff] %vm108_vm2, %v94_v9  ;;  %v105_v11 = vadd.f32 %v135_v10, %v117_v5 }
  0xd0   :  { %v96_v12 = vpop.f32.mrf.mxu0 }
  0xd1   :  { %112 = vst.msk [vmem:[%s191_s3 + $0x18] sm:$0xff] %vm108_vm2, %v105_v11  ;;  %v97_v13 = vadd.f32 %v117_v5, %v96_v12 }
  0xd3   :  { %110 = vst.msk [vmem:[%s191_s3 + $0x8] sm:$0xff] %vm108_vm2, %v97_v13 }

</bundles_post_ra>
